<compile_context>
chip_gen: v6e
topology: v6e:2x2x1
jax: 0.10.0
libtpu: 0.0.40
codegen_flags: <defaults>
</compile_context>

<pallas_src>
import functools

import jax
import jax.numpy as jnp
from jax.experimental import pallas as pl
from jax.experimental.pallas import tpu as pltpu


MODE_EXPAND = "MODE_EXPAND"
MODE_ADD = "MODE_ADD"
MODE_CONCAT = "MODE_CONCAT"

_VMEM_LIMIT_BYTES = 32 * 1024 * 1024          # safe on v5e/v6e/v7x
_TARGET_BLOCK_BYTES = 2 * 1024 * 1024         # ~2 MiB tiles amortize per-step overhead


def _round_up(x, m):
    return (x + m - 1) // m * m


def _batch_tile(batch, bytes_per_row):
    """Pick rows-per-block: big enough to amortize ~600-cycle step overhead, multiple of 8."""
    tb = max(8, (_TARGET_BLOCK_BYTES // max(bytes_per_row, 1)) // 8 * 8)
    if batch <= tb:
        return batch, 1                       # single full-extent block (always layout-legal)
    return tb, pl.cdiv(batch, tb)             # partial last block handled by Pallas


# ----------------------------------------------------------------------------
# MODE_ADD: out = x + weight[:seq_len][None]      x: (B, S, D)
# ----------------------------------------------------------------------------
def _add_kernel(x_ref, w_ref, o_ref):
    # x: (TB, S, D) or (TB, S*D); w has a leading broadcast dim of 1.
    o_ref[...] = (x_ref[...] + w_ref[...]).astype(o_ref.dtype)


def position_embedding_add(x, weight):
    B, S, D = x.shape
    itemsize = jnp.dtype(x.dtype).itemsize
    TB, steps = _batch_tile(B, S * D * itemsize)
    cp = pltpu.CompilerParams(dimension_semantics=("parallel",),
                              vmem_limit_bytes=_VMEM_LIMIT_BYTES)

    if D % 128 == 0:
        # D is already lane-dense: keep 3-D blocks, no host-side relayout of x / output.
        w = weight[:S, :][None, :, :].astype(x.dtype)           # (1, S, D)
        return pl.pallas_call(
            _add_kernel,
            out_shape=jax.ShapeDtypeStruct((B, S, D), x.dtype),
            grid=(steps,),
            in_specs=[pl.BlockSpec((TB, S, D), lambda i: (i, 0, 0)),
                      pl.BlockSpec((1, S, D), lambda i: (0, 0, 0))],
            out_specs=pl.BlockSpec((TB, S, D), lambda i: (i, 0, 0)),
            compiler_params=cp,
        )(x, w)

    # D < 128: fold (S, D) onto the lane axis so the add / store is lane-dense.
    x2 = x.reshape(B, S * D)
    w2 = weight[:S, :].reshape(1, S * D).astype(x.dtype)
    out = pl.pallas_call(
        _add_kernel,
        out_shape=jax.ShapeDtypeStruct((B, S * D), x.dtype),
        grid=(steps,),
        in_specs=[pl.BlockSpec((TB, S * D), lambda i: (i, 0)),
                  pl.BlockSpec((1, S * D), lambda i: (0, 0))],
        out_specs=pl.BlockSpec((TB, S * D), lambda i: (i, 0)),
        compiler_params=cp,
    )(x2, w2)
    return out.reshape(B, S, D)


# ----------------------------------------------------------------------------
# MODE_CONCAT: out = concat(x, weight[:seq_len] broadcast over batch) on last dim.
# Two slice stores per batch tile (no in-kernel concatenate temp).
# ----------------------------------------------------------------------------
def _concat_kernel(x_ref, w_ref, o_ref):
    tb, s, d = x_ref.shape
    o_ref[:, :, :d] = x_ref[...]
    o_ref[:, :, d:] = jnp.broadcast_to(w_ref[...], (tb, s, d)).astype(o_ref.dtype)


def position_embedding_concat(x, weight):
    B, S, D = x.shape
    itemsize = jnp.dtype(x.dtype).itemsize
    TB, steps = _batch_tile(B, 3 * S * D * itemsize)            # x block + 2D-wide out block
    w = weight[:S, :][None, :, :].astype(x.dtype)               # (1, S, D)
    return pl.pallas_call(
        _concat_kernel,
        out_shape=jax.ShapeDtypeStruct((B, S, 2 * D), x.dtype),
        grid=(steps,),
        in_specs=[pl.BlockSpec((TB, S, D), lambda i: (i, 0, 0)),
                  pl.BlockSpec((1, S, D), lambda i: (0, 0, 0))],
        out_specs=pl.BlockSpec((TB, S, 2 * D), lambda i: (i, 0, 0)),
        compiler_params=pltpu.CompilerParams(dimension_semantics=("parallel",),
                                             vmem_limit_bytes=_VMEM_LIMIT_BYTES),
    )(x, w)


# ----------------------------------------------------------------------------
# MODE_EXPAND: indices = clamp(x, -N, N) + N ; out = weight[indices]
# Vectorized per token tile: VPU clamp + one-hot MXU matmul against the (padded)
# VMEM-resident weight table.  f32 one-hot @ f32 weights at HIGHEST precision keeps
# the gather exact (each output row is 1.0 * one weight row + zeros).
# ----------------------------------------------------------------------------
def _expand_kernel(idx_ref, w_ref, o_ref, *, num_embeddings):
    tok = o_ref.shape[0]
    vpad = w_ref.shape[0]
    idx = jnp.clip(idx_ref[...], -num_embeddings, num_embeddings) + num_embeddings  # (TOK, 1)
    cols = jax.lax.broadcasted_iota(jnp.int32, (tok, vpad), 1)
    onehot = (cols == idx).astype(w_ref.dtype)                                      # (TOK, Vpad)
    o_ref[...] = jnp.dot(onehot, w_ref[...],
                         preferred_element_type=jnp.float32,
                         precision=jax.lax.Precision.HIGHEST).astype(o_ref.dtype)


def position_embedding_expand(x_idx, weight, num_embeddings):
    B, S = x_idx.shape
    n_rows, D = weight.shape
    BS = B * S

    vpad = _round_up(n_rows, 128)                              # MXU-friendly contraction dim
    w_pad = weight if vpad == n_rows else jnp.pad(weight, ((0, vpad - n_rows), (0, 0)))
    idx2 = x_idx.reshape(BS, 1).astype(jnp.int32)

    TOK = BS if BS <= 256 else 256                             # token tile (mult of 8 or full)
    steps = pl.cdiv(BS, TOK)

    kern = functools.partial(_expand_kernel, num_embeddings=num_embeddings)
    out = pl.pallas_call(
        kern,
        out_shape=jax.ShapeDtypeStruct((BS, D), weight.dtype),
        grid=(steps,),
        in_specs=[pl.BlockSpec((TOK, 1), lambda i: (i, 0)),
                  pl.BlockSpec((vpad, D), lambda i: (0, 0))],
        out_specs=pl.BlockSpec((TOK, D), lambda i: (i, 0)),
        compiler_params=pltpu.CompilerParams(dimension_semantics=("parallel",),
                                             vmem_limit_bytes=_VMEM_LIMIT_BYTES),
    )(idx2, w_pad)
    return out.reshape(B, S, D)


# ----------------------------------------------------------------------------
# Forward dispatcher mirroring PositionEmbedding.forward.
# ----------------------------------------------------------------------------
def position_embedding_forward(x, weight, *, mode=MODE_ADD, num_embeddings=None):
    if mode == MODE_EXPAND:
        return position_embedding_expand(x, weight, num_embeddings)
    if mode == MODE_ADD:
        return position_embedding_add(x, weight)
    if mode == MODE_CONCAT:
        return position_embedding_concat(x, weight)
    raise NotImplementedError(f"Unknown mode: {mode}")


# ----------------------------------------------------------------------------
# Pure-JAX references.
# ----------------------------------------------------------------------------
def ref_add(x, weight):
    S = x.shape[1]
    return x + weight[:S][None]


def ref_concat(x, weight):
    B, S, D = x.shape
    return jnp.concatenate([x, jnp.broadcast_to(weight[:S][None], (B, S, D))], axis=-1)


def ref_expand(x_idx, weight, num_embeddings):
    idx = jnp.clip(x_idx, -num_embeddings, num_embeddings) + num_embeddings
    return jnp.take(weight, idx, axis=0)


# ----------------------------------------------------------------------------
# Main: deterministic inputs, run all three modes, check, print KERNEL_OK.
# ----------------------------------------------------------------------------
if __name__ == "__main__":
    B, S, D = 2, 8, 32
    num_embeddings = 16

    key = jax.random.PRNGKey(0)
    k1, k2, k3, k4 = jax.random.split(key, 4)

    # MODE_ADD ----------------------------------------------------------------
    weight = jax.random.normal(k1, (num_embeddings, D), jnp.float32)
    x = jax.random.normal(k2, (B, S, D), jnp.float32)
    out_add = jax.block_until_ready(position_embedding_forward(x, weight, mode=MODE_ADD))
    assert out_add.shape == (B, S, D)
    assert jnp.allclose(out_add, ref_add(x, weight), rtol=1e-6, atol=1e-6), "MODE_ADD mismatch"

    # MODE_CONCAT -------------------------------------------------------------
    out_cat = jax.block_until_ready(position_embedding_forward(x, weight, mode=MODE_CONCAT))
    assert out_cat.shape == (B, S, 2 * D)
    assert jnp.allclose(out_cat, ref_concat(x, weight), rtol=1e-6, atol=1e-6), "MODE_CONCAT mismatch"

    # MODE_EXPAND -------------------------------------------------------------
    weight_exp = jax.random.normal(k3, (2 * num_embeddings + 1, D), jnp.float32)
    x_idx = jax.random.randint(k4, (B, S), -num_embeddings - 5, num_embeddings + 5, dtype=jnp.int32)
    out_exp = jax.block_until_ready(
        position_embedding_forward(x_idx, weight_exp, mode=MODE_EXPAND,
                                   num_embeddings=num_embeddings))
    assert out_exp.shape == (B, S, D)
    assert jnp.allclose(out_exp, ref_expand(x_idx, weight_exp, num_embeddings),
                        rtol=1e-5, atol=1e-5), "MODE_EXPAND mismatch"

    print("KERNEL_OK")
</pallas_src>

<mosaic_0001>
module attributes {stable_mosaic.version = 11 : i64} {
  func.func @_add_kernel(%arg0: i32, %arg1: memref<2x256xf32, #tpu.memory_space<vmem>>, %arg2: memref<1x256xf32, #tpu.memory_space<vmem>>, %arg3: memref<2x256xf32, #tpu.memory_space<vmem>>) attributes {dimension_semantics = [#tpu.dimension_semantics<parallel>], iteration_bounds = array<i64: 1>, scalar_prefetch = 0 : i64, scratch_operands = 0 : i64, tpu.core_type = #tpu.core_type<tc>, window_params = [{transform_indices = @transform_0, window_bounds = array<i64: 2, 256>}, {pipeline_mode = #tpu.pipeline_mode<synchronous>, transform_indices = @transform_1, window_bounds = array<i64: 1, 256>}, {transform_indices = @transform_2, window_bounds = array<i64: 2, 256>}]} {
    %c0 = arith.constant 0 : index
    %c0_0 = arith.constant 0 : index
    %0 = vector.load %arg1[%c0, %c0_0] : memref<2x256xf32, #tpu.memory_space<vmem>>, vector<2x256xf32>
    %c0_1 = arith.constant 0 : index
    %c0_2 = arith.constant 0 : index
    %1 = vector.load %arg2[%c0_1, %c0_2] : memref<1x256xf32, #tpu.memory_space<vmem>>, vector<1x256xf32>
    %2 = vector.broadcast %1 : vector<1x256xf32> to vector<2x256xf32>
    %3 = arith.addf %0, %2 : vector<2x256xf32>
    %c0_3 = arith.constant 0 : index
    %c0_4 = arith.constant 0 : index
    %4 = vector.load %arg3[%c0_3, %c0_4] : memref<2x256xf32, #tpu.memory_space<vmem>>, vector<2x256xf32>
    tpu.vector_store %arg3[%c0_3, %c0_4], %3 {strides = array<i32>} : memref<2x256xf32, #tpu.memory_space<vmem>>, vector<2x256xf32>,
    return
  }
  func.func @transform_0(%arg0: i32) -> (i32, i32) {
    %c0_i32 = arith.constant 0 : i32
    %c0_i32_0 = arith.constant 0 : i32
    return %arg0, %c0_i32 : i32, i32
  }
  func.func @transform_1(%arg0: i32) -> (i32, i32) {
    %c0_i32 = arith.constant 0 : i32
    %c0_i32_0 = arith.constant 0 : i32
    %c0_i32_1 = arith.constant 0 : i32
    return %c0_i32, %c0_i32_0 : i32, i32
  }
  func.func @transform_2(%arg0: i32) -> (i32, i32) {
    %c0_i32 = arith.constant 0 : i32
    %c0_i32_0 = arith.constant 0 : i32
    return %arg0, %c0_i32 : i32, i32
  }
}

</mosaic_0001>

<bundles_post_ra>
// kernel: tpu_custom_call.1
= control target key start
LH: loop header
LB: loop body
LE: loop exit
PB: predicated region body
PF: predicated region fallthrough
CT: control target
= control target key end

     0   :  { %7 = vsyncpa [#allocation3], 0  ;;  %s172_s0 = inlined_call_operand.hbm [shape: f32[2,256], index: 0, kind: input, shape index: {}]   ;;  %s173_s1 = inlined_call_operand.hbm [shape: f32[1,256], index: 1, kind: input, shape index: {}]   ;;  %s174_s2 = inlined_call_operand.hbm [shape: f32[2,256], index: 2, kind: output, shape index: {}]  }
   0x1   :  { %8 = vsyncpa [#allocation6], 0 }
   0x2   :  { %9 = vsyncpa [#allocation4], 0  ;;  %s144_s9 = smov [#allocation2]   ;;  %s145_s11 = smov [#allocation5]  }
   0x3   :  { %s16_s10 = sshll.u32 %s144_s9, 4  ;;  %s26_s12 = sshll.u32 %s145_s11, 4  ;;  %s17_s10 = int_to_ptr.vmem [resolvable:$true] %s16_s10  ;;  %s27_s12 = int_to_ptr.vmem [resolvable:$true] %s26_s12 }
   0x4   :  { %s86_s13 = scalar_lea.vmem %s17_s10, 64  ;;  %p91_p1 = scmp.lt.s32.totalorder %s17_s10, %s17_s10 }
   0x5   :  { %p87_p0 = scmp.ne.s32.totalorder %s17_s10, %s86_s13  ;;  %p92_p2 = scmp.lt.s32.totalorder %s86_s13, %s86_s13 }
   0x7   :  { %p93_p3 = por %p92_p2, %p91_p1 }
   0x9   :  { %p94_p4 = pnand %p93_p3, %p87_p0 }
   0xb   :  { %97 = shalt.err (!%p94_p4)
}
   0xc   :  { %19 = dma.hbm_to_vmem [thread:$0]  %s172_s0, 64, %s17_s10, [#allocation3]  }
   0xd   :  { %s106_s16 = scalar_lea.vmem %s27_s12, 32  ;;  %p111_p6 = scmp.lt.s32.totalorder %s27_s12, %s27_s12 }
   0xe   :  { %p107_p5 = scmp.ne.s32.totalorder %s27_s12, %s106_s16  ;;  %p112_p7 = scmp.lt.s32.totalorder %s106_s16, %s106_s16 }
  0x10   :  { %p113_p8 = por %p112_p7, %p111_p6 }
  0x12   :  { %p114_p9 = pnand %p113_p8, %p107_p5 }
  0x14   :  { %117 = shalt.err (!%p114_p9)
}
  0x15   :  { %29 = dma.hbm_to_vmem [thread:$0]  %s173_s1, 32, %s27_s12, [#allocation6]  }
  0x16   :  { %138 = dma.done.wait [#allocation3], 64  }
  0x17   :  { %139 = vsyncadd [#allocation3], 4294967232 }
  0x18   :  { %140 = dma.done.wait [#allocation6], 32  }
  0x19   :  { %141 = vsyncadd [#allocation6], 4294967264  ;;  %v39_v0 = vlaneseq  ;;  %v146_v1 = vmov 1983009808   ;;  %v37_v7 = vld [vmem:[#allocation5] sm:$0x3] }
  0x1a   :  { %v49_v2 = vunpack.c.l.s4 %v146_v1  ;;  %v36_v12 = vld [vmem:[#allocation2] sm:$0xf]  ;;  %s147_s0 = smov [#allocation7]  }
  0x1b   :  { %v40_v3 = vshrl.u32 %v39_v0, 7  ;;  %s64_s19 = sshll.u32 %s147_s0, 4  ;;  %s65_s19 = int_to_ptr.vmem [resolvable:$true] %s64_s19 }
  0x1c   :  { %v50_v6 = vunpack.c.0.s8 %v49_v2  ;;  %s118_s1 = scalar_lea.vmem %s65_s19, 64  ;;  %p123_p11 = scmp.lt.s32.totalorder %s65_s19, %s65_s19 }
  0x1d   :  { %v41_v4 = vsub.s32 0, %v40_v3  ;;  %v45_v5 = vsub.s32 1, %v40_v3  ;;  %p119_p10 = scmp.ne.s32.totalorder %s65_s19, %s118_s1  ;;  %p124_p12 = scmp.lt.s32.totalorder %s118_s1, %s118_s1 }
  0x1e   :  { %v53_v10 = vsub.s32 %v50_v6, %v40_v3 }
  0x1f   :  { %v42_v8 = vrot.slane %v37_v7, %v41_v4  ;;  %v46_v9 = vrot.slane %v37_v7, %v45_v5  ;;  %p125_p13 = por %p124_p12, %p123_p11 }
  0x21   :  { %v47_v11 = vcombine.low %v42_v8, %v46_v9  ;;  %p126_p0 = pnand %p125_p13, %p119_p10 }
  0x23   :  { %v54_v13 = vrot.slane %v47_v11, %v53_v10 }
  0x25   :  { %v56_v14 = vadd.f32 %v54_v13, %v36_v12 }
  0x27   :  { %57 = vst [vmem:[#allocation7] sm:$0xf] %v56_v14 }
  0x28   :  { %129 = shalt.err (!%p126_p0)
}
  0x29   :  { %67 = dma.vmem_to_hbm [thread:$0]  %s65_s19, 64, %s174_s2, [#allocation4]  }
  0x2a   :  { %142 = dma.done.wait [#allocation4], 64  }
  0x2b   :  { %143 = vsyncadd [#allocation4], 4294967232 }
  0x2c   :  { %71 = vsyncpa [#allocation3], 1 }
  0x2d   :  { %72 = vsyncpa [#allocation6], 1 }
  0x2e   :  { %73 = vsyncpa [#allocation4], 1 }

</bundles_post_ra>
